<compile_context>
chip_gen: v7x
topology: tpu7x:2x2x1
jax: 0.10.0
libtpu: 0.0.40
codegen_flags: <defaults>
</compile_context>

<pallas_src>
import functools

import jax
import jax.numpy as jnp
from jax.experimental import pallas as pl
from jax.experimental.pallas import tpu as pltpu

LAMBD = 100.0

_PARTIAL_SUB = 8      # sublanes of the per-block partial-sum tile (one full vreg)
_PARTIAL_LANE = 128   # lanes of the per-block partial-sum tile


def _round_up(x, m):
    return ((x + m - 1) // m) * m


def _cdiv(a, b):
    return -(-a // b)


def _rhythmnet_partial_kernel(resnet_ref, target_ref, gru_ref, partial_ref,
                              *, batch, block_rows):
    """Per-block raw partial sums for both loss terms."""
    i = pl.program_id(0)
    # Rows of this block that lie inside the true batch.  The last block may be
    # partial; its out-of-range rows hold unspecified data (possibly NaN/Inf),
    # so they are masked with jnp.where BEFORE any sum (selection, not multiply,
    # so a NaN in padding cannot propagate).
    rows_left = batch - i * block_rows
    row_ids = jax.lax.broadcasted_iota(jnp.int32, resnet_ref.shape, 0)
    valid = row_ids < rows_left

    # ----- L1 component: raw sum of |resnet - target| over valid rows -----
    r = resnet_ref[...].astype(jnp.float32)
    t = target_ref[...].astype(jnp.float32)
    l1_partial = jnp.sum(jnp.where(valid, jnp.abs(r - t), 0.0))

    # ----- Smooth component: raw sum of |gru - rowmean(gru)| over valid rows --
    # Full T per block, so each row's mean is exact (matches torch mean(dim=1));
    # a garbage row only poisons its own (masked-out) deviations.
    g = gru_ref[...].astype(jnp.float32)
    g_mean = jnp.mean(g, axis=1, keepdims=True)
    smooth_partial = jnp.sum(jnp.where(valid, jnp.abs(g - g_mean), 0.0))

    # Pack both partial sums into one lane-dense (8, 128) tile (unmasked vst):
    #   sublane 0 -> l1 partial, sublane 1 -> smooth partial, rest zeros.
    sub = jax.lax.broadcasted_iota(jnp.int32, (_PARTIAL_SUB, _PARTIAL_LANE), 0)
    tile = jnp.where(sub == 0, l1_partial,
                     jnp.where(sub == 1, smooth_partial, 0.0))
    partial_ref[0] = tile.astype(jnp.float32)


def _vmem_capacity_bytes():
    """Physical VMEM per TensorCore; conservative (v7x-like) fallback."""
    try:
        cap = getattr(pltpu.get_tpu_info(), "vmem_capacity_bytes", None)
        if cap:
            return int(cap)
    except Exception:
        pass
    return 64 << 20


def _choose_block_rows(batch, seq, itemsize, input_budget_bytes):
    """Rows per batch block: multiple of 8 (or the full batch when batch < 8),
    sized so the double-buffered input tiles fit the budget, and capped so the
    grid has >=2 (>=4 for larger batches) steps for pipelining / dual-TC."""
    if batch < 8:
        return batch                                   # full-dim block, no padding

    lane_pad_seq = _round_up(seq, 128)                 # VMEM pads lanes to 128
    per_row_bytes = 3 * 2 * lane_pad_seq * itemsize    # 3 inputs, double-buffered
    tb = input_budget_bytes // per_row_bytes
    tb = max(8, (tb // 8) * 8)

    padded_b = _round_up(batch, 8)
    if padded_b >= 32:      # >=4 steps: pipeline overlap + both v7x TCs busy
        cap = _round_up(_cdiv(padded_b, 4), 8)
    elif padded_b >= 16:    # >=2 steps
        cap = _round_up(_cdiv(padded_b, 2), 8)
    else:
        cap = padded_b
    return max(8, min(tb, cap))


def rhythmnet_loss(resnet_outputs, gru_outputs, target):
    """Pallas RhythmNetLoss forward: returns (l1_loss, lambd * smooth_loss)."""
    assert gru_outputs.ndim == 2
    assert resnet_outputs.shape == target.shape == gru_outputs.shape, (
        "kernel assumes resnet_outputs, gru_outputs and target share a (B, T) shape")

    B, T = gru_outputs.shape
    itemsize = max(jnp.dtype(a.dtype).itemsize
                   for a in (resnet_outputs, gru_outputs, target))

    # Generation-aware VMEM budgeting.
    vmem_cap = _vmem_capacity_bytes()
    if vmem_cap > (96 << 20):            # v5e / v6e: 128 MiB physical VMEM
        input_budget = 28 << 20
        vmem_limit_cap = 96 << 20
    else:                                # v7x: 64 MiB per TensorCore
        input_budget = 20 << 20
        vmem_limit_cap = 48 << 20

    tb = _choose_block_rows(B, T, itemsize, input_budget)
    num_blocks = _cdiv(B, tb)

    lane_pad_t = _round_up(T, 128)
    vmem_need = (3 * 2 * tb * lane_pad_t * itemsize            # pipelined inputs
                 + 2 * _PARTIAL_SUB * _PARTIAL_LANE * 4)       # pipelined outputs
    vmem_limit = int(min(vmem_limit_cap, max(4 << 20, vmem_need + (2 << 20))))

    bytes_in = sum(int(a.size) * jnp.dtype(a.dtype).itemsize
                   for a in (resnet_outputs, gru_outputs, target))
    cost = pl.CostEstimate(
        flops=int(6 * B * T),
        transcendentals=0,
        bytes_accessed=int(bytes_in
                           + num_blocks * _PARTIAL_SUB * _PARTIAL_LANE * 4),
    )

    kernel = functools.partial(_rhythmnet_partial_kernel, batch=B, block_rows=tb)
    in_spec = pl.BlockSpec((tb, T), lambda i: (i, 0))
    partials = pl.pallas_call(
        kernel,
        out_shape=jax.ShapeDtypeStruct(
            (num_blocks, _PARTIAL_SUB, _PARTIAL_LANE), jnp.float32),
        grid=(num_blocks,),
        in_specs=[in_spec, in_spec, in_spec],
        out_specs=pl.BlockSpec((1, _PARTIAL_SUB, _PARTIAL_LANE),
                               lambda i: (i, 0, 0)),
        compiler_params=pltpu.CompilerParams(
            dimension_semantics=("parallel",),
            vmem_limit_bytes=vmem_limit),
        cost_estimate=cost,
    )(resnet_outputs, target, gru_outputs)

    # Tiny finalize: one divide by the TRUE element count, then LAMBD scaling.
    denom = jnp.float32(B * T)
    l1 = jnp.sum(partials[:, 0, 0]) / denom
    weighted_smooth = LAMBD * (jnp.sum(partials[:, 1, 0]) / denom)
    return l1, weighted_smooth


def _reference(resnet_outputs, gru_outputs, target):
    r = resnet_outputs.astype(jnp.float32)
    t = target.astype(jnp.float32)
    g = gru_outputs.astype(jnp.float32)
    l1 = jnp.mean(jnp.abs(r - t))
    g_mean = jnp.mean(g, axis=1, keepdims=True)
    smooth = jnp.mean(jnp.abs(g - g_mean))
    return l1, LAMBD * smooth


if __name__ == "__main__":
    key = jax.random.PRNGKey(0)
    k1, k2, k3 = jax.random.split(key, 3)

    B, T = 2, 8  # batch=2, seq/time=8 (typical RhythmNet clip count)
    resnet_outputs = jax.random.normal(k1, (B, T), dtype=jnp.float32) * 10.0 + 70.0
    gru_outputs = jax.random.normal(k2, (B, T), dtype=jnp.float32) * 10.0 + 70.0
    target = jax.random.normal(k3, (B, T), dtype=jnp.float32) * 10.0 + 70.0

    loss_fn = jax.jit(rhythmnet_loss)
    l1_loss, weighted_smooth = loss_fn(resnet_outputs, gru_outputs, target)
    jax.block_until_ready((l1_loss, weighted_smooth))

    ref_l1, ref_ws = _reference(resnet_outputs, gru_outputs, target)
    assert jnp.allclose(l1_loss, ref_l1, rtol=1e-5, atol=1e-5), (l1_loss, ref_l1)
    assert jnp.allclose(weighted_smooth, ref_ws, rtol=1e-5, atol=1e-5), (
        weighted_smooth, ref_ws)

    print("KERNEL_OK")
</pallas_src>

<mosaic_0001>
module attributes {stable_mosaic.version = 11 : i64} {
  func.func @_rhythmnet_partial_kernel(%arg0: i32, %arg1: memref<2x8xf32, #tpu.memory_space<vmem>>, %arg2: memref<2x8xf32, #tpu.memory_space<vmem>>, %arg3: memref<2x8xf32, #tpu.memory_space<vmem>>, %arg4: memref<1x8x128xf32, #tpu.memory_space<vmem>>) attributes {dimension_semantics = [#tpu.dimension_semantics<parallel>], iteration_bounds = array<i64: 1>, scalar_prefetch = 0 : i64, scratch_operands = 0 : i64, tpu.core_type = #tpu.core_type<tc>, window_params = [{transform_indices = @transform_0, window_bounds = array<i64: 2, 8>}, {transform_indices = @transform_1, window_bounds = array<i64: 2, 8>}, {transform_indices = @transform_2, window_bounds = array<i64: 2, 8>}, {transform_indices = @transform_3, window_bounds = array<i64: 1, 8, 128>}]} {
    %c2_i32 = arith.constant 2 : i32
    %0 = arith.muli %arg0, %c2_i32 : i32
    %c2_i32_0 = arith.constant 2 : i32
    %1 = arith.subi %c2_i32_0, %0 : i32
    %2 = tpu.iota {dimensions = array<i32: 0>} : vector<2x8xi32>
    %3 = vector.broadcast %1 : i32 to vector<2x8xi32>
    %4 = arith.cmpi slt, %2, %3 : vector<2x8xi32>
    %c0 = arith.constant 0 : index
    %c0_1 = arith.constant 0 : index
    %5 = vector.load %arg1[%c0, %c0_1] : memref<2x8xf32, #tpu.memory_space<vmem>>, vector<2x8xf32>
    %c0_2 = arith.constant 0 : index
    %c0_3 = arith.constant 0 : index
    %6 = vector.load %arg2[%c0_2, %c0_3] : memref<2x8xf32, #tpu.memory_space<vmem>>, vector<2x8xf32>
    %7 = arith.subf %5, %6 : vector<2x8xf32>
    %8 = math.absf %7 : vector<2x8xf32>
    %cst = arith.constant 0.000000e+00 : f32
    %9 = vector.broadcast %cst : f32 to vector<2x8xf32>
    %10 = arith.select %4, %8, %9 : vector<2x8xi1>, vector<2x8xf32>
    %11 = vector.shape_cast %10 : vector<2x8xf32> to vector<1x2x8xf32>
    %cst_4 = arith.constant dense<0.000000e+00> : vector<1xf32>
    %12 = vector.multi_reduction <add>, %11, %cst_4 [1, 2] : vector<1x2x8xf32> to vector<1xf32>
    %13 = vector.shape_cast %12 : vector<1xf32> to vector<1x1x1xf32>
    %14 = vector.extract %13[0, 0, 0] : f32 from vector<1x1x1xf32>
    %c0_5 = arith.constant 0 : index
    %c0_6 = arith.constant 0 : index
    %15 = vector.load %arg3[%c0_5, %c0_6] : memref<2x8xf32, #tpu.memory_space<vmem>>, vector<2x8xf32>
    %cst_7 = arith.constant dense<0.000000e+00> : vector<2xf32>
    %16 = vector.multi_reduction <add>, %15, %cst_7 [1] : vector<2x8xf32> to vector<2xf32>
    %17 = vector.shape_cast %16 : vector<2xf32> to vector<2x1xf32>
    %cst_8 = arith.constant 8.000000e+00 : f32
    %18 = vector.broadcast %cst_8 : f32 to vector<2x1xf32>
    %19 = arith.divf %17, %18 : vector<2x1xf32>
    %20 = vector.broadcast %19 : vector<2x1xf32> to vector<2x8xf32>
    %21 = arith.subf %15, %20 : vector<2x8xf32>
    %22 = math.absf %21 : vector<2x8xf32>
    %cst_9 = arith.constant 0.000000e+00 : f32
    %23 = vector.broadcast %cst_9 : f32 to vector<2x8xf32>
    %24 = arith.select %4, %22, %23 : vector<2x8xi1>, vector<2x8xf32>
    %25 = vector.shape_cast %24 : vector<2x8xf32> to vector<1x2x8xf32>
    %cst_10 = arith.constant dense<0.000000e+00> : vector<1xf32>
    %26 = vector.multi_reduction <add>, %25, %cst_10 [1, 2] : vector<1x2x8xf32> to vector<1xf32>
    %27 = vector.shape_cast %26 : vector<1xf32> to vector<1x1x1xf32>
    %28 = vector.extract %27[0, 0, 0] : f32 from vector<1x1x1xf32>
    %29 = tpu.iota {dimensions = array<i32: 0>} : vector<8x128xi32>
    %c0_i32 = arith.constant 0 : i32
    %30 = vector.broadcast %c0_i32 : i32 to vector<8x128xi32>
    %31 = arith.cmpi eq, %29, %30 : vector<8x128xi32>
    %c1_i32 = arith.constant 1 : i32
    %32 = vector.broadcast %c1_i32 : i32 to vector<8x128xi32>
    %33 = arith.cmpi eq, %29, %32 : vector<8x128xi32>
    %cst_11 = arith.constant 0.000000e+00 : f32
    %34 = vector.broadcast %28 : f32 to vector<8x128xf32>
    %35 = vector.broadcast %cst_11 : f32 to vector<8x128xf32>
    %36 = arith.select %33, %34, %35 : vector<8x128xi1>, vector<8x128xf32>
    %37 = vector.broadcast %14 : f32 to vector<8x128xf32>
    %38 = arith.select %31, %37, %36 : vector<8x128xi1>, vector<8x128xf32>
    %c0_12 = arith.constant 0 : index
    %c0_13 = arith.constant 0 : index
    %c0_14 = arith.constant 0 : index
    %39 = vector.load %arg4[%c0_12, %c0_13, %c0_14] : memref<1x8x128xf32, #tpu.memory_space<vmem>>, vector<1x8x128xf32>
    %40 = vector.shape_cast %39 : vector<1x8x128xf32> to vector<8x128xf32>
    %41 = vector.shape_cast %38 : vector<8x128xf32> to vector<1x8x128xf32>
    tpu.vector_store %arg4[%c0_12, %c0_13, %c0_14], %41 {strides = array<i32>} : memref<1x8x128xf32, #tpu.memory_space<vmem>>, vector<1x8x128xf32>,
    return
  }
  func.func @transform_0(%arg0: i32) -> (i32, i32) {
    %c0_i32 = arith.constant 0 : i32
    %c0_i32_0 = arith.constant 0 : i32
    return %arg0, %c0_i32 : i32, i32
  }
  func.func @transform_1(%arg0: i32) -> (i32, i32) {
    %c0_i32 = arith.constant 0 : i32
    %c0_i32_0 = arith.constant 0 : i32
    return %arg0, %c0_i32 : i32, i32
  }
  func.func @transform_2(%arg0: i32) -> (i32, i32) {
    %c0_i32 = arith.constant 0 : i32
    %c0_i32_0 = arith.constant 0 : i32
    return %arg0, %c0_i32 : i32, i32
  }
  func.func @transform_3(%arg0: i32) -> (i32, i32, i32) {
    %c0_i32 = arith.constant 0 : i32
    %c0_i32_0 = arith.constant 0 : i32
    %c0_i32_1 = arith.constant 0 : i32
    return %arg0, %c0_i32, %c0_i32_0 : i32, i32, i32
  }
}

</mosaic_0001>

<bundles_post_ra>
// kernel: rhythmnet_loss.1
= control target key start
LH: loop header
LB: loop body
LE: loop exit
PB: predicated region body
PF: predicated region fallthrough
CT: control target
= control target key end

     0   :  { %8 = vsyncpa [#allocation3], 0  ;;  %s201_s0 = inlined_call_operand.hbm [shape: f32[2,8], index: 0, kind: input, shape index: {}]   ;;  %s202_s1 = inlined_call_operand.vmem [shape: f32[2,8], index: 1, kind: input, shape index: {}]   ;;  %s203_s2 = inlined_call_operand.hbm [shape: f32[2,8], index: 2, kind: input, shape index: {}]   ;;  %s204_s3 = inlined_call_operand.vmem [shape: f32[1,8,128], index: 3, kind: output, shape index: {}]  }
   0x1   :  { %9 = vsyncpa [#allocation5], 0  ;;  %s146_s12 = smov [#allocation2]   ;;  %s147_s14 = smov [#allocation4]  }
   0x2   :  { %s16_s13 = sshll.u32 %s146_s12, 4  ;;  %s28_s15 = sshll.u32 %s147_s14, 4  ;;  %s17_s13 = int_to_ptr.vmem [resolvable:$true] %s16_s13  ;;  %s29_s15 = int_to_ptr.vmem [resolvable:$true] %s28_s15 }
   0x3   :  { %s98_s18 = scalar_lea.hbm %s201_s0, 32 }
   0x4   :  { %p99_p0 = scmp.ne.s32.totalorder %s201_s0, %s98_s18  ;;  %p102_p1 = scmp.lt.u32.totalorder %s98_s18, %s201_s0 }
   0x6   :  { %p104_p2 = pnand %p102_p1, %p99_p0 }
   0x8   :  { %107 = shalt.err (!%p104_p2)
}
   0x9   :  { %s108_s23 = scalar_lea.vmem %s17_s13, 32  ;;  %p113_p4 = scmp.lt.s32.totalorder %s17_s13, %s17_s13 }
   0xa   :  { %p109_p3 = scmp.ne.s32.totalorder %s17_s13, %s108_s23  ;;  %p114_p5 = scmp.lt.s32.totalorder %s108_s23, %s108_s23 }
   0xc   :  { %p115_p6 = por %p114_p5, %p113_p4 }
   0xe   :  { %p116_p7 = pnand %p115_p6, %p109_p3 }
  0x10   :  { %119 = shalt.err (!%p116_p7)
}
  0x11   :  { %19 = dma.hbm_to_vmem [thread:$0]  %s201_s0, 32, %s17_s13, [#allocation3]  }
  0x12   :  { %s120_s28 = scalar_lea.hbm %s203_s2, 32 }
  0x13   :  { %p121_p8 = scmp.ne.s32.totalorder %s203_s2, %s120_s28  ;;  %p124_p9 = scmp.lt.u32.totalorder %s120_s28, %s203_s2 }
  0x15   :  { %p126_p10 = pnand %p124_p9, %p121_p8 }
  0x17   :  { %129 = shalt.err (!%p126_p10)
}
  0x18   :  { %s130_s6 = scalar_lea.vmem %s29_s15, 32  ;;  %p135_p12 = scmp.lt.s32.totalorder %s29_s15, %s29_s15 }
  0x19   :  { %p131_p11 = scmp.ne.s32.totalorder %s29_s15, %s130_s6  ;;  %p136_p13 = scmp.lt.s32.totalorder %s130_s6, %s130_s6 }
  0x1b   :  { %p137_p0 = por %p136_p13, %p135_p12 }
  0x1d   :  { %p138_p1 = pnand %p137_p0, %p131_p11 }
  0x1f   :  { %141 = shalt.err (!%p138_p1)
}
  0x20   :  { %31 = dma.hbm_to_vmem [thread:$0]  %s203_s2, 32, %s29_s15, [#allocation5]  }
  0x21   :  { %142 = dma.done.wait [#allocation3], 32  }
  0x22   :  { %143 = vsyncadd [#allocation3], 4294967264 }
  0x23   :  { %144 = dma.done.wait [#allocation5], 32  }
  0x24   :  { %145 = vsyncadd [#allocation5], 4294967264  ;;  %vm49_vm0 = vcmask 58368   ;;  %v60_v0 = vld [vmem:[#allocation4] sm:$0x3]  ;;  %v40_v2 = vlaneseq }
  0x25   :  { %v61_v1 = vsel %vm49_vm0, %v60_v0, 0.0  ;;  %v44_v3 = vld [vmem:[#allocation2] sm:$0x3]  ;;  %v45_v4 = vld [vmem:[%s202_s1] sm:$0x3] }
  0x26   :  { %62 = vadd.xlane.f32.xlu0 %v61_v1  ;;  %v46_v5 = vsub.f32 %v44_v3, %v45_v4  ;;  %v41_v6 = vshrl.u32 %v40_v2, 7 }
  0x28   :  { %v47_v7 = vand.u32 2147483647, %v46_v5  ;;  %vm43_vm1 = vcmp.lt.s32.totalorder %v41_v6, 2  ;;  %vm80_vm2 = vcmp.eq.s32.totalorder %v41_v6, 1  ;;  %vm79_vm3 = vcmp.eq.s32.totalorder %v41_v6, 0 }
  0x2a   :  { %v48_v8 = vsel %vm43_vm1, %v47_v7, 0.0 }
  0x2b   :  { %v50_v9 = vsel %vm49_vm0, %v48_v8, 0.0 }
  0x2c   :  { %51 = vadd.xlane.f32.xlu0 %v50_v9 }
  0xb3   :  { %v63_v10 = vpop.xlane.xlu0 %62 }
  0xb4   :  { %v65_v11 = vmul.f32 0.125, %v63_v10 }
  0xb6   :  { %v66_v12 = vsub.f32 %v60_v0, %v65_v11 }
  0xb8   :  { %v67_v13 = vand.u32 2147483647, %v66_v12 }
  0xb9   :  { %v52_v16 = vpop.xlane.xlu0 %51 }
  0xba   :  { %v68_v14 = vsel %vm43_vm1, %v67_v13, 0.0  ;;  %v53_v17 = vrot.slane %v52_v16, 4 }
  0xbb   :  { %v69_v15 = vsel %vm49_vm0, %v68_v14, 0.0 }
  0xbc   :  { %70 = vadd.xlane.f32.xlu1 %v69_v15  ;;  %v54_v18 = vadd.f32 %v53_v17, %v52_v16 }
  0xbe   :  { %v55_v19 = vrot.slane %v54_v18, 2 }
  0xc0   :  { %v56_v20 = vadd.f32 %v55_v19, %v54_v18 }
  0xc2   :  { %v57_v21 = vrot.slane %v56_v20, 1 }
  0xc4   :  { %v58_v22 = vadd.f32 %v57_v21, %v56_v20 }
  0xc6   :  { %92 = vpush %v58_v22 }
  0xf7   :  { %s93_s1 = spop %92 }
  0xf8   :  { %v83_v31 = vstv %s93_s1 }
 0x149   :  { %v71_v23 = vpop.xlane.xlu1 %70 }
 0x14a   :  { %v72_v24 = vrot.slane %v71_v23, 4 }
 0x14c   :  { %v73_v25 = vadd.f32 %v72_v24, %v71_v23 }
 0x14e   :  { %v74_v26 = vrot.slane %v73_v25, 2 }
 0x150   :  { %v75_v27 = vadd.f32 %v74_v26, %v73_v25 }
 0x152   :  { %v76_v28 = vrot.slane %v75_v27, 1 }
 0x154   :  { %v77_v29 = vadd.f32 %v76_v28, %v75_v27 }
 0x156   :  { %94 = vpush %v77_v29 }
 0x187   :  { %s95_s2 = spop %94 }
 0x188   :  { %v81_v30 = vstv %s95_s2 }
 0x189   :  { %v82_v32 = vsel %vm80_vm2, %v81_v30, 0.0 }
 0x18a   :  { %v84_v33 = vsel %vm79_vm3, %v83_v31, %v82_v32 }
 0x18b   :  { %85 = vst [vmem:[%s204_s3] sm:$0xff] %v84_v33 }
 0x18c   :  { %90 = vsyncpa [#allocation3], 1 }
 0x18d   :  { %91 = vsyncpa [#allocation5], 1 }

</bundles_post_ra>
